<compile_context>
chip_gen: v6e
topology: v6e:2x2x1
jax: 0.10.0
libtpu: 0.0.40
codegen_flags: <defaults>
</compile_context>

<pallas_src>
from typing import NamedTuple, Optional

import jax
import jax.numpy as jnp
from jax.experimental import pallas as pl
from jax.experimental.pallas import tpu as pltpu


class InterFeatState(NamedTuple):
    y: jax.Array
    alpha: jax.Array


def _identity_kernel(x_ref, y_ref):
    # Pure pass-through of one lane-dense tile.
    y_ref[...] = x_ref[...]


_TARGET_BLOCK_BYTES = 2 * 1024 * 1024  # ~2 MiB/tile -> 4 live buffers <= 8 MiB VMEM


def _plan_layout(shape, dtype):
    """Pick a lane-dense 2D view (R, L) of x and a row tile TR for the copy."""
    total = 1
    for d in shape:
        total *= int(d)
    itemsize = jnp.dtype(dtype).itemsize

    # Prefer a last dim that is a multiple of 128 so stores are unmasked vst.
    L = None
    for cand in (1024, 512, 256, 128):
        if total % cand == 0:
            L = cand
            break
    if L is None:
        # TODO(synk): element count not divisible by 128 -> fall back to the
        # natural trailing dim (block spans the full last dim; masked stores).
        L = int(shape[-1]) if len(shape) > 0 else 1
    R = total // max(L, 1)

    # Row tile: ~_TARGET_BLOCK_BYTES per block, multiple of 8 (or the full dim).
    tr_raw = max(1, _TARGET_BLOCK_BYTES // max(L * itemsize, 1))
    if tr_raw >= R or R <= 8:
        TR = R
    else:
        TR = max(8, (tr_raw // 8) * 8)
    return total, R, L, TR, itemsize


class NullIntermediateFeatureNormalizer:
    """Pallas equivalent of the PyTorch NullIntermediateFeatureNormalizer."""

    instances = dict()

    def __init__(self, dtype=jnp.float32):
        self.dtype = dtype
        # register_buffer('alpha', torch.tensor(1, dtype=dtype))
        self.alpha = jnp.asarray(1, dtype=dtype)

    @staticmethod
    def get_instance(dtype=jnp.float32):
        inst = NullIntermediateFeatureNormalizer.instances.get(dtype, None)
        if inst is None:
            inst = NullIntermediateFeatureNormalizer(dtype)
            NullIntermediateFeatureNormalizer.instances[dtype] = inst
        return inst

    def __call__(self, x, index: int, rot_index: Optional[int] = None,
                 skip: Optional[int] = None) -> InterFeatState:
        # index / rot_index / skip are unused, matching the torch module.
        total, R, L, TR, itemsize = _plan_layout(x.shape, x.dtype)
        x2d = x.reshape(R, L)
        steps = pl.cdiv(R, TR)

        y2d = pl.pallas_call(
            _identity_kernel,
            out_shape=jax.ShapeDtypeStruct((R, L), x.dtype),
            grid_spec=pltpu.PrefetchScalarGridSpec(
                num_scalar_prefetch=0,
                grid=(steps,),
                in_specs=[pl.BlockSpec((TR, L), lambda i: (i, 0))],
                out_specs=pl.BlockSpec((TR, L), lambda i: (i, 0)),
            ),
            # Identity copy: alias/donate x's buffer into y (no second HBM array
            # when XLA can donate; it falls back to a copy otherwise).
            input_output_aliases={0: 0},
            compiler_params=pltpu.CompilerParams(
                dimension_semantics=("parallel",),
            ),
            cost_estimate=pl.CostEstimate(
                flops=0, transcendentals=0,
                bytes_accessed=2 * total * itemsize),
        )(x2d)

        # alpha is a compile-time constant buffer (== 1); no kernel work needed.
        return InterFeatState(y=y2d.reshape(x.shape), alpha=self.alpha)


if __name__ == "__main__":
    key = jax.random.PRNGKey(0)
    B, N, C = 2, 8, 32  # batch, tokens (seq), hidden channels
    x = jax.random.normal(key, (B, N, C), dtype=jnp.float32)

    norm = NullIntermediateFeatureNormalizer.get_instance(jnp.float32)
    state = norm(x, index=0)

    y = jax.block_until_ready(state.y)
    alpha = jax.block_until_ready(state.alpha)

    assert y.shape == x.shape and y.dtype == x.dtype
    assert jnp.array_equal(y, x)
    assert alpha.shape == () and alpha.dtype == jnp.float32 and float(alpha) == 1.0

    print("KERNEL_OK")
</pallas_src>

<mosaic_0001>
module attributes {stable_mosaic.version = 11 : i64} {
  func.func @_identity_kernel(%arg0: i32, %arg1: memref<1x512xf32, #tpu.memory_space<vmem>>, %arg2: memref<1x512xf32, #tpu.memory_space<vmem>>) attributes {dimension_semantics = [#tpu.dimension_semantics<parallel>], iteration_bounds = array<i64: 1>, scalar_prefetch = 0 : i64, scratch_operands = 0 : i64, tpu.core_type = #tpu.core_type<tc>, window_params = [{transform_indices = @transform_0, window_bounds = array<i64: 1, 512>}, {transform_indices = @transform_1, window_bounds = array<i64: 1, 512>}]} {
    %c0 = arith.constant 0 : index
    %c0_0 = arith.constant 0 : index
    %0 = vector.load %arg1[%c0, %c0_0] : memref<1x512xf32, #tpu.memory_space<vmem>>, vector<1x512xf32>
    %c0_1 = arith.constant 0 : index
    %c0_2 = arith.constant 0 : index
    %1 = vector.load %arg2[%c0_1, %c0_2] : memref<1x512xf32, #tpu.memory_space<vmem>>, vector<1x512xf32>
    tpu.vector_store %arg2[%c0_1, %c0_2], %0 {strides = array<i32>} : memref<1x512xf32, #tpu.memory_space<vmem>>, vector<1x512xf32>,
    return
  }
  func.func @transform_0(%arg0: i32) -> (i32, i32) {
    %c0_i32 = arith.constant 0 : i32
    %c0_i32_0 = arith.constant 0 : i32
    return %arg0, %c0_i32 : i32, i32
  }
  func.func @transform_1(%arg0: i32) -> (i32, i32) {
    %c0_i32 = arith.constant 0 : i32
    %c0_i32_0 = arith.constant 0 : i32
    return %arg0, %c0_i32 : i32, i32
  }
}

</mosaic_0001>

<bundles_post_ra>
// kernel: tpu_custom_call.1
= control target key start
LH: loop header
LB: loop body
LE: loop exit
PB: predicated region body
PF: predicated region fallthrough
CT: control target
= control target key end

     0   :  { %6 = vsyncpa [#allocation3], 0  ;;  %s106_s0 = inlined_call_operand.hbm [shape: f32[1,512], index: 0, kind: input, shape index: {}, may-alias: {0,1}]   ;;  %s107_s1 = inlined_call_operand.hbm [shape: f32[1,512], index: 1, kind: output, shape index: {}, may-alias: {0,1}]  }
   0x1   :  { %7 = vsyncpa [#allocation4], 0  ;;  %s88_s6 = smov [#allocation2]  }
   0x2   :  { %s14_s7 = sshll.u32 %s88_s6, 4  ;;  %s15_s7 = int_to_ptr.vmem [resolvable:$true] %s14_s7 }
   0x3   :  { %s52_s8 = scalar_lea.vmem %s15_s7, 64  ;;  %p57_p1 = scmp.lt.s32.totalorder %s15_s7, %s15_s7 }
   0x4   :  { %p53_p0 = scmp.ne.s32.totalorder %s15_s7, %s52_s8  ;;  %p58_p2 = scmp.lt.s32.totalorder %s52_s8, %s52_s8 }
   0x6   :  { %p59_p3 = por %p58_p2, %p57_p1 }
   0x8   :  { %p60_p4 = pnand %p59_p3, %p53_p0 }
   0xa   :  { %63 = shalt.err (!%p60_p4)
}
   0xb   :  { %17 = dma.hbm_to_vmem [thread:$0]  %s106_s0, 64, %s15_s7, [#allocation3]  }
   0xc   :  { %84 = dma.done.wait [#allocation3], 64  }
   0xd   :  { %85 = vsyncadd [#allocation3], 4294967232  ;;  %v22_v0 = vlaneseq  ;;  %s89_s11 = smov [#allocation5]   ;;  %v21_v1 = vld [vmem:[#allocation2] sm:$0xf] }
   0xe   :  { %s33_s12 = sshll.u32 %s89_s11, 4  ;;  %s34_s12 = int_to_ptr.vmem [resolvable:$true] %s33_s12 }
   0xf   :  { %vm24_vm0 = vcmp.lt.s32.totalorder %v22_v0, 512  ;;  %s64_s13 = scalar_lea.vmem %s34_s12, 64  ;;  %p69_p6 = scmp.lt.s32.totalorder %s34_s12, %s34_s12 }
  0x10   :  { %26 = vst.msk [vmem:[#allocation5] sm:$0xf] %vm24_vm0, %v21_v1  ;;  %p65_p5 = scmp.ne.s32.totalorder %s34_s12, %s64_s13  ;;  %p70_p7 = scmp.lt.s32.totalorder %s64_s13, %s64_s13 }
  0x12   :  { %p71_p8 = por %p70_p7, %p69_p6 }
  0x14   :  { %p72_p9 = pnand %p71_p8, %p65_p5 }
  0x16   :  { %75 = shalt.err (!%p72_p9)
}
  0x17   :  { %36 = dma.vmem_to_hbm [thread:$0]  %s34_s12, 64, %s107_s1, [#allocation4]  }
  0x18   :  { %86 = dma.done.wait [#allocation4], 64  }
  0x19   :  { %87 = vsyncadd [#allocation4], 4294967232 }
  0x1a   :  { %40 = vsyncpa [#allocation3], 1 }
  0x1b   :  { %41 = vsyncpa [#allocation4], 1 }

</bundles_post_ra>
